<compile_context>
chip_gen: v6e
topology: v6e:2x2x1
jax: 0.10.0
libtpu: 0.0.40
codegen_flags: <defaults>
</compile_context>

<pallas_src>
import jax
import jax.numpy as jnp
from jax.experimental import pallas as pl
from jax.experimental.pallas import tpu as pltpu


# ---------------------------------------------------------------------------
# Kernels: pure broadcast FMA / add over one (1, Ct, HWt) tile of x.
# ---------------------------------------------------------------------------
def _affine_kernel(scale_ref, shift_ref, x_ref, o_ref):
    # scale_ref/shift_ref: (1, Ct, 1) f32; x_ref/o_ref: (1, Ct, HWt)
    x = x_ref[...].astype(jnp.float32)
    o_ref[...] = (x * scale_ref[...] + shift_ref[...]).astype(o_ref.dtype)


def _add_kernel(shift_ref, x_ref, o_ref):
    # shift_ref: (1, Ct, 1) f32; x_ref/o_ref: (1, Ct, HWt)
    x = x_ref[...].astype(jnp.float32)
    o_ref[...] = (x + shift_ref[...]).astype(o_ref.dtype)


# ---------------------------------------------------------------------------
# Tile selection: lane-dense spatial tiles, sublane-full channel tiles,
# block bytes capped so double-buffered in+out fits all VMEM budgets.
# ---------------------------------------------------------------------------
def _pick_tiles(C, HW, dtype_bytes=4, max_block_bytes=2 * 1024 * 1024):
    # Spatial (lane) tile: largest multiple of 128 dividing HW, capped at 8192.
    if HW % 128 == 0:
        hwt = 128
        cap = min(HW, 8192)
        for cand in range(cap, 127, -128):
            if HW % cand == 0:
                hwt = cand
                break
    else:
        # HW < 128 or odd spatial sizes: fall back to a full-extent block
        # (allowed since block dim == array dim); tensors here are tiny anyway.
        hwt = HW

    # Channel (sublane) tile: multiple of 8 dividing C, subject to the byte cap.
    if C % 8 == 0:
        max_ct = max(8, max_block_bytes // (hwt * dtype_bytes))
        ct = 8
        for cand in range(min(C, (max_ct // 8) * 8), 7, -8):
            if C % cand == 0:
                ct = cand
                break
    else:
        ct = C  # full-extent channel block (toy shapes like C=4)
    return ct, hwt


# ---------------------------------------------------------------------------
# Wrapper
# ---------------------------------------------------------------------------
def feature_wise_affine(x, noise_embed, weight, bias, *,
                        use_affine_level=False, donate_x=False):
    """Pallas TPU implementation of FeatureWiseAffine.forward.

    x:           (B, C, H, W)           (NCHW, as in PyTorch)
    noise_embed: (B, D_in)
    weight:      (C*(1+affine), D_in)   nn.Linear weight layout
    bias:        (C*(1+affine),)
    donate_x:    alias the output onto x's buffer (only if x is dead after).
    """
    B, C, H, W = x.shape
    HW = H * W

    # --- Linear hoisted out of the kernel (plain JAX GEMV, f32) -------------
    noise = (noise_embed.astype(jnp.float32) @ weight.astype(jnp.float32).T
             + bias.astype(jnp.float32))                     # (B, C*(1+affine))

    x3 = x.reshape(B, C, HW)
    ct, hwt = _pick_tiles(C, HW, dtype_bytes=jnp.dtype(x.dtype).itemsize)
    grid = (B, C // ct, HW // hwt)

    x_spec = pl.BlockSpec((1, ct, hwt), lambda b, c, s: (b, c, s))
    p_spec = pl.BlockSpec((1, ct, 1), lambda b, c, s: (b, c, 0))
    out_spec = x_spec

    cparams = pltpu.CompilerParams(
        dimension_semantics=("parallel", "parallel", "parallel"))

    out_shape = jax.ShapeDtypeStruct((B, C, HW), x.dtype)

    if use_affine_level:
        assert weight.shape == (2 * C, weight.shape[1]) and bias.shape == (2 * C,)
        gamma = noise[:, :C]                                  # chunk(2, dim=1)
        beta = noise[:, C:]
        scale = (1.0 + gamma).reshape(B, C, 1)                # pre-add the +1
        shift = beta.reshape(B, C, 1)
        io_alias = {2: 0} if donate_x else {}
        out3 = pl.pallas_call(
            _affine_kernel,
            out_shape=out_shape,
            grid_spec=pltpu.PrefetchScalarGridSpec(
                num_scalar_prefetch=0,
                grid=grid,
                in_specs=[p_spec, p_spec, x_spec],
                out_specs=out_spec),
            compiler_params=cparams,
            input_output_aliases=io_alias,
        )(scale, shift, x3)
    else:
        assert weight.shape == (C, weight.shape[1]) and bias.shape == (C,)
        shift = noise.reshape(B, C, 1)
        io_alias = {1: 0} if donate_x else {}
        out3 = pl.pallas_call(
            _add_kernel,
            out_shape=out_shape,
            grid_spec=pltpu.PrefetchScalarGridSpec(
                num_scalar_prefetch=0,
                grid=grid,
                in_specs=[p_spec, x_spec],
                out_specs=out_spec),
            compiler_params=cparams,
            input_output_aliases=io_alias,
        )(shift, x3)

    return out3.reshape(B, C, H, W)


# ---------------------------------------------------------------------------
# Pure-JAX reference replicating the PyTorch forward exactly.
# ---------------------------------------------------------------------------
def _reference(x, noise_embed, weight, bias, *, use_affine_level=False):
    B, C, H, W = x.shape
    noise = noise_embed @ weight.T + bias                    # (B, C*(1+affine))
    noise = noise.reshape(B, -1, 1, 1)
    if use_affine_level:
        gamma, beta = noise[:, :C], noise[:, C:]
        return (1.0 + gamma) * x + beta
    return x + noise


def _init_linear_params(key, in_features, out_features):
    kw, kb = jax.random.split(key)
    bound = 1.0 / (in_features ** 0.5)
    w = jax.random.uniform(kw, (out_features, in_features), jnp.float32,
                           minval=-bound, maxval=bound)
    b = jax.random.uniform(kb, (out_features,), jnp.float32,
                           minval=-bound, maxval=bound)
    return w, b


if __name__ == "__main__":
    key = jax.random.PRNGKey(0)
    k_x, k_ne, k_p0, k_p1 = jax.random.split(key, 4)

    B, C, H, W = 2, 4, 16, 16          # x is NCHW
    D_in = 32                          # noise embedding width (in_channels)

    x = jax.random.normal(k_x, (B, C, H, W), jnp.float32)
    noise_embed = jax.random.normal(k_ne, (B, D_in), jnp.float32)

    ok = True

    # use_affine_level = False (module default): x = x + Linear(ne)[..., None, None]
    w0, b0 = _init_linear_params(k_p0, D_in, C)
    out0 = jax.block_until_ready(
        feature_wise_affine(x, noise_embed, w0, b0, use_affine_level=False))
    ref0 = _reference(x, noise_embed, w0, b0, use_affine_level=False)
    ok &= bool(jnp.allclose(out0, ref0, atol=1e-5, rtol=1e-5))

    # use_affine_level = True: x = (1 + gamma) * x + beta
    w1, b1 = _init_linear_params(k_p1, D_in, 2 * C)
    out1 = jax.block_until_ready(
        feature_wise_affine(x, noise_embed, w1, b1, use_affine_level=True))
    ref1 = _reference(x, noise_embed, w1, b1, use_affine_level=True)
    ok &= bool(jnp.allclose(out1, ref1, atol=1e-5, rtol=1e-5))

    if ok:
        print("KERNEL_OK")
    else:
        print("KERNEL_MISMATCH")
</pallas_src>

<mosaic_0001>
module attributes {stable_mosaic.version = 11 : i64} {
  func.func @_add_kernel(%arg0: i32, %arg1: i32, %arg2: i32, %arg3: memref<1x4x1xf32, #tpu.memory_space<vmem>>, %arg4: memref<1x4x256xf32, #tpu.memory_space<vmem>>, %arg5: memref<1x4x256xf32, #tpu.memory_space<vmem>>) attributes {dimension_semantics = [#tpu.dimension_semantics<parallel>, #tpu.dimension_semantics<parallel>, #tpu.dimension_semantics<parallel>], iteration_bounds = array<i64: 2, 1, 1>, scalar_prefetch = 0 : i64, scratch_operands = 0 : i64, tpu.core_type = #tpu.core_type<tc>, window_params = [{transform_indices = @transform_0, window_bounds = array<i64: 1, 4, 1>}, {transform_indices = @transform_1, window_bounds = array<i64: 1, 4, 256>}, {transform_indices = @transform_2, window_bounds = array<i64: 1, 4, 256>}]} {
    %c0 = arith.constant 0 : index
    %c0_0 = arith.constant 0 : index
    %c0_1 = arith.constant 0 : index
    %0 = vector.load %arg4[%c0, %c0_0, %c0_1] : memref<1x4x256xf32, #tpu.memory_space<vmem>>, vector<1x4x256xf32>
    %c0_2 = arith.constant 0 : index
    %c0_3 = arith.constant 0 : index
    %c0_4 = arith.constant 0 : index
    %1 = vector.load %arg3[%c0_2, %c0_3, %c0_4] : memref<1x4x1xf32, #tpu.memory_space<vmem>>, vector<1x4x1xf32>
    %2 = vector.broadcast %1 : vector<1x4x1xf32> to vector<1x4x256xf32>
    %3 = arith.addf %0, %2 : vector<1x4x256xf32>
    %c0_5 = arith.constant 0 : index
    %c0_6 = arith.constant 0 : index
    %c0_7 = arith.constant 0 : index
    %4 = vector.load %arg5[%c0_5, %c0_6, %c0_7] : memref<1x4x256xf32, #tpu.memory_space<vmem>>, vector<1x4x256xf32>
    tpu.vector_store %arg5[%c0_5, %c0_6, %c0_7], %3 {strides = array<i32>} : memref<1x4x256xf32, #tpu.memory_space<vmem>>, vector<1x4x256xf32>,
    return
  }
  func.func @transform_0(%arg0: i32, %arg1: i32, %arg2: i32) -> (i32, i32, i32) {
    %c0_i32 = arith.constant 0 : i32
    %c0_i32_0 = arith.constant 0 : i32
    return %arg0, %arg1, %c0_i32 : i32, i32, i32
  }
  func.func @transform_1(%arg0: i32, %arg1: i32, %arg2: i32) -> (i32, i32, i32) {
    %c0_i32 = arith.constant 0 : i32
    return %arg0, %arg1, %arg2 : i32, i32, i32
  }
  func.func @transform_2(%arg0: i32, %arg1: i32, %arg2: i32) -> (i32, i32, i32) {
    %c0_i32 = arith.constant 0 : i32
    return %arg0, %arg1, %arg2 : i32, i32, i32
  }
}

</mosaic_0001>

<bundles_post_ra>
// kernel: tpu_custom_call.1
= control target key start
LH: loop header
LB: loop body
LE: loop exit
PB: predicated region body
PF: predicated region fallthrough
CT: control target
= control target key end

     0   :  { %7 = vsyncpa [#allocation3], 0  ;;  %s713_s0 = inlined_call_operand.vmem [shape: f32[2,4,1], index: 0, kind: input, shape index: {}]   ;;  %s714_s1 = inlined_call_operand.hbm [shape: f32[2,4,256], index: 1, kind: input, shape index: {}]   ;;  %s715_s2 = inlined_call_operand.hbm [shape: f32[2,4,256], index: 2, kind: output, shape index: {}]  }
   0x1   :  { %9 = vsyncpa [#allocation3 + $0x1], 0 }
   0x2   :  { %10 = vsyncpa [#allocation4], 0 }
   0x3   :  { %12 = vsyncpa [#allocation4 + $0x1], 0  ;;  %s574_s9 = smov 0   ;;  %s576_s10 = smov 0  }
   0x4   :  { %s578_s11 = smov 0   ;;  %s580_s12 = smov 0  }
   0x5   :  { %s582_s13 = smov 0   ;;  %s584_s14 = smov 0  }
   0x6 LB: > { %s362_s15 = sadd.s32 4294967295, %s553_s14   ;;  %s363_s16 = sadd.s32 4294967294, %s553_s14   ;;  %s553_s14 = sphi %s584_s14, %s18_s14   ;;  %s549_s13 = sphi %s582_s13, %s727_s13   ;;  %s545_s12 = sphi %s580_s12, %s726_s12   ;;  %s541_s11 = sphi %s578_s11, %s725_s11   ;;  %s537_s10 = sphi %s576_s10, %s724_s10   ;;  %s533_s9 = sphi %s574_s9, %s723_s9  }
   0x7   : > { %s37_s17 = sadd.s32 1, %s549_s13  ;;  %s76_s18 = sadd.s32 1, %s541_s11 }
   0x8   : > { %p39_p0 = scmp.ge.s32.totalorder %s37_s17, 2  ;;  %p83_p1 = scmp.ne.s32.totalorder %s541_s11, %s537_s10 }
   0x9   : > { %p84_p2 = scmp.eq.s32.totalorder %s553_s14, 0  ;;  %p89_p3 = scmp.ne.s32.totalorder %s537_s10, %s533_s9 }
   0xa   : > { %s729_s17 = smov (%p39_p0, %s37_s17), 0  ;;  %p90_p5 = scmp.eq.s32.totalorder %s362_s15, 0 }
   0xb   : > { %p615_p4 = por %p84_p2, %p83_p1  ;;  %s69_s20 = ssub.s32 %s549_s13, %s729_s17 }
   0xc   : > { %p117_p6 = scmp.eq.s32.totalorder %s362_s15, 1  ;;  %p74_p7 = scmp.eq.s32.totalorder %s69_s20, 0 }
   0xd   : > { %p621_p8 = por %p90_p5, %p89_p3  ;;  %p123_p10 = scmp.eq.s32.totalorder %s363_s16, 1 }
   0xe   : > { %p625_p9 = por %p117_p6, %p83_p1  ;;  %p392_p13 = scmp.lt.s32.totalorder %s553_s14, 2 }
   0xf   : > { %s630_s23 = scalar_select %p74_p7, %s541_s11, %s76_s18  }
  0x10   : > { %p632_p11 = por %p123_p10, %p89_p3  ;;  %s153_s25 = sand.u32 1, %s541_s11  }
  0x11   : > { %s366_s26 = sshll.u32 %s153_s25, 3  ;;  %s378_s27 = sshll.u32 %s549_s13, 7 }
  0x12   : > { %s719_s24 = scalar_select %p632_p11, 1, 0 }
  0x13   : > { %s167_s30 = scalar_lea.hbm %s714_s1, %s378_s27  ;;  %s157_s3 = scalar_lea.vmem [#allocation2], %s366_s26 }
  0x14   : > { %s169_s4 = sshll.u32 %s157_s3, 4  ;;  %p645_p0 = pnand %p392_p13, %p615_p4  ;;  %s170_s4 = int_to_ptr.vmem [resolvable:$true] %s169_s4 }
  0x15   : > { %p369_p1 = scmp.ge.s32.totalorder %s553_s14, 1  ;;  %p174_p2 = scmp.lt.s32.totalorder %s553_s14, 3 }
  0x16   : > { %s154_s6 = scalar_lea.sflag [#allocation3], %s153_s25  ;;  %p447_p3 = pneg %p645_p0 }
  0x17   : > { %s458_s7 = scalar_lea.vmem %s170_s4, 128  ;;  %s555_s8 = smov [#allocation2]  }
  0x18   : > { %p459_p5 = scmp.ne.s32.totalorder %s170_s4, %s458_s7  ;;  %s463_s15 = sshll.u32 %s555_s8, 4  ;;  %s464_s15 = int_to_ptr.vmem [resolvable:$false] %s463_s15 }
  0x19   : > { %s465_s16 = scalar_lea.vmem %s464_s15, 256  ;;  %p466_p10 = scmp.lt.s32.totalorder %s170_s4, %s464_s15 }
  0x1a   : > { %p461_p6 = pnand %p459_p5, %p447_p3  ;;  %p467_p12 = scmp.lt.s32.totalorder %s465_s16, %s458_s7 }
  0x1c   : > { %p462_p7 = pneg %p461_p6  ;;  %p468_p4 = por %p467_p12, %p466_p10 }
  0x1e   : > { %p469_p13 = pnand %p468_p4, %p462_p7 }
  0x20   : > { %472 = shalt.err (!%p469_p13)
}
  0x21   : > { %387 = dma.hbm_to_vmem [thread:$0]  (!%p645_p0), %s167_s30, 128, %s170_s4, %s154_s6  }
  0x22   : > { %p175_p11 = pnand %p369_p1, %p174_p2 }
  0x23   : > { %s660_s18 = sand.u32 (!%p175_p11), 1, %s537_s10  }
  0x24   : > { %178 = sbr.rel (%p175_p11) target bundleno = 190 (0xbe), region = 28  ;;  %s370_s19 = sshll.u32 (!%p175_p11), %s660_s18, 3 }
  0x25   : > { %s181_s20 = scalar_lea.sflag (!%p175_p11), [#allocation3], %s660_s18  ;;  %s184_s25 = scalar_lea.vmem (!%p175_p11), [#allocation2], %s370_s19 }
  0x29   : > { %524 = dma.done.wait (%p621_p8), %s181_s20, 128  }
  0x2a   : > { %526 = vsyncadd (%p621_p8), %s181_s20, 4294967168  ;;  %p212_p12 = scmp.lt.s32.totalorder %s545_s12, 1  ;;  %v556_v0 = vmov 0   ;;  %v557_v2 = vmov 839922192   ;;  %v230_v4 = vlaneseq  ;;  %v221_v9 = vld [vmem:[%s184_s25] sm:$0xff] }
  0x2b   : > { %444 = vset.pattern.permute.xlu0 %v556_v0  ;;  %v228_v3 = vunpack.c.l.s4 %v557_v2  ;;  %s379_s21 = sshll.u32 %s545_s12, 7  ;;  %s211_s3 = scalar_lea.vmem [#allocation5], %s370_s19 }
  0x2c   : > { %s213_s26 = scalar_select %p212_p12, %s545_s12, 1  ;;  %v231_v6 = vshrl.u32 %v230_v4, 7 }
  0x2d   : > { %v229_v5 = vunpack.c.0.s8 %v228_v3  ;;  %s256_s4 = sshll.u32 %s211_s3, 4  ;;  %s254_s7 = scalar_lea.hbm %s715_s2, %s379_s21  ;;  %s257_s4 = int_to_ptr.vmem [resolvable:$true] %s256_s4 }
  0x2e   : > { %s372_s27 = sshll.u32 %s213_s26, 2  ;;  %s238_s8 = scalar_lea.sflag [#allocation4], %s660_s18 }
  0x2f   : > { %s218_s30 = scalar_lea.vmem %s713_s0, %s372_s27  ;;  %v232_v7 = vsub.s32 %v229_v5, %v231_v6  ;;  %s473_s15 = scalar_lea.vmem %s257_s4, 128 }
  0x30   : > { %v222_v1 = vld [vmem:[%s218_s30] sm:$0xf]  ;;  %p474_p8 = scmp.ne.s32.totalorder %s257_s4, %s473_s15  ;;  %s558_s16 = smov [#allocation5]  }
  0x31   : > { %225 = vperm.xlu0 %444, %v222_v1   ;;  %s477_s20 = sshll.u32 %s558_s16, 4  ;;  %s478_s20 = int_to_ptr.vmem [resolvable:$false] %s477_s20 }
  0x32   : > { %p475_p11 = pnand %p474_p8, %p625_p9  ;;  %s479_s12 = scalar_lea.vmem %s478_s20, 256 }
  0x33   : > { %p480_p1 = scmp.lt.s32.totalorder %s257_s4, %s478_s20  ;;  %p481_p2 = scmp.lt.s32.totalorder %s479_s12, %s473_s15 }
  0x34   : > { %p476_p0 = pneg %p475_p11 }
  0x35   : > { %p482_p3 = por %p481_p2, %p480_p1 }
  0x37   : > { %p483_p5 = pnand %p482_p3, %p476_p0 }
  0xac   : > { %v226_v8 = vpop.permute.xlu0 %225 }
  0xad   : > { %v233_v10 = vrot.slane %v226_v8, %v232_v7 }
  0xaf   : > { %v235_v11 = vadd.f32 %v233_v10, %v221_v9 }
  0xb1   : > { %236 = vst [vmem:[%s211_s3] sm:$0xff] %v235_v11 }
  0xb2   : > { %486 = shalt.err (!%p483_p5)
}
  0xb3   : > { %s487_s19 = scalar_lea.hbm %s254_s7, 128  ;;  %s491_s26 = scalar_lea.hbm %s715_s2, 256 }
  0xb4   : > { %p488_p6 = scmp.ne.s32.totalorder %s254_s7, %s487_s19  ;;  %p492_p4 = scmp.lt.s32.totalorder %s254_s7, %s715_s2 }
  0xb5   : > { %p493_p13 = scmp.lt.s32.totalorder %s491_s26, %s487_s19 }
  0xb6   : > { %p489_p7 = pnand %p488_p6, %p625_p9 }
  0xb7   : > { %p494_p12 = por %p493_p13, %p492_p4 }
  0xb8   : > { %p490_p10 = pneg %p489_p7 }
  0xba   : > { %p495_p8 = pnand %p494_p12, %p490_p10 }
  0xbc   : > { %498 = shalt.err (!%p495_p8)
}
  0xbd   : > { %382 = dma.vmem_to_hbm [thread:$0]  (%p625_p9), %s257_s4, 128, %s254_s7, %s238_s8  }
  0xbe PF: > { %s268_s29 = sand.u32 1, %s533_s9   ;;  %p721_p11 = scmp.ne.s32.totalorder %s719_s24, 0 }
  0xbf   : > { %p722_p0 = scmp.ge.s32.totalorder %s553_s14, 2  ;;  %s269_s30 = scalar_lea.sflag [#allocation4], %s268_s29 }
  0xc1   : > { %p389_p1 = pnand %p722_p0, %p721_p11 }
  0xc3   : > { %p390_p2 = pneg %p389_p1 }
  0xc5   : > { %528 = dma.done.wait (%p390_p2), %s269_s30, 128  }
  0xc6   : > { %530 = vsyncadd (%p390_p2), %s269_s30, 4294967168  ;;  %s18_s14 = sadd.s32 1, %s553_s14   ;;  %s723_s9 = smov %s537_s10 }
  0xc7   : > { %p15_p3 = scmp.ge.s32.totalorder %s18_s14, 4   ;;  %s724_s10 = smov %s541_s11 }
  0xc8   : > { %s725_s11 = smov %s630_s23  ;;  %s726_s12 = smov %s549_s13 }
  0xc9   : > { %s727_s13 = smov %s729_s17  ;;  %17 = sbr.rel (!%p15_p3) target bundleno = 6 (0x6), region = 76 }
  0xce   :  { %274 = vsyncpa [#allocation3], 1 }
  0xcf   :  { %276 = vsyncpa [#allocation3 + $0x1], 1 }
  0xd0   :  { %277 = vsyncpa [#allocation4], 1 }
  0xd1   :  { %279 = vsyncpa [#allocation4 + $0x1], 1 }

</bundles_post_ra>
